<compile_context>
chip_gen: v7x
topology: tpu7x:2x2x1
jax: 0.10.0
libtpu: 0.0.40
codegen_flags: <defaults>
</compile_context>

<pallas_src>
import jax
import jax.numpy as jnp
from jax.experimental import pallas as pl
from jax.experimental.pallas import tpu as pltpu


def _tanh_kernel(x_ref, o_ref):
    # Elementwise tanh on the VMEM tile (EUP transcendental path, hidden under DMA).
    o_ref[...] = jnp.tanh(x_ref[...])


def _round_up(a: int, b: int) -> int:
    return -(-a // b) * b


def _tpu_generation():
    """Best-effort TPU generation (int) from the device kind string."""
    try:
        kind = jax.devices()[0].device_kind.lower()
    except Exception:
        return None
    for g in (7, 6, 5, 4, 3, 2):
        if (f"v{g}" in kind) or (f"tpu{g}" in kind) or (f"tpu {g}" in kind):
            return g
    return None


def tanh_pallas(
    x: jax.Array,
    *,
    target_block_bytes: int | None = None,
    min_pallas_bytes: int = 128 * 1024,
    donate_input: bool = False,
) -> jax.Array:
    """Elementwise tanh via a Pallas TPU kernel. Matches torch.tanh(x)."""
    orig_shape = x.shape
    n = x.size
    if n == 0:
        return x
    if not jnp.issubdtype(x.dtype, jnp.floating):
        # torch.tanh promotes integer inputs to float; jnp.tanh does the same.
        return jnp.tanh(x)

    itemsize = jnp.dtype(x.dtype).itemsize
    nbytes = n * itemsize

    # Tiny tensors: pallas_call launch + reshape plumbing dominate and XLA can
    # fuse tanh into neighbouring ops — just use the fused elementwise path.
    if nbytes < min_pallas_bytes:
        return jnp.tanh(x)

    # Lane (last) dim: widest multiple of 128 that divides n exactly, so the
    # slab reshape needs NO padding and stores are full-width unmasked vst.
    lanes = 0
    for cand in (1024, 512, 256, 128):
        if n % cand == 0:
            lanes = cand
            break
    if lanes == 0:
        # Padding would cost an extra HBM read+write pass over the tensor,
        # which is slower than letting XLA do the fused tanh.
        return jnp.tanh(x)

    rows = n // lanes
    # Sublane pack: 8 for 4-byte, 16 for 2-byte, 32 for 1-byte dtypes.
    pack = max(8, 32 // itemsize)

    # ---- generation-aware block / VMEM budgets ------------------------------
    gen = _tpu_generation()
    two_cores = gen is not None and gen >= 7            # v7x: 2 TensorCores/chip
    if gen in (5, 6):                                    # 128 MiB physical VMEM
        vmem_limit = 64 * 1024 * 1024
        auto_block = 8 * 1024 * 1024
        if gen == 5 and itemsize < 4:
            # v5e has no bf16 VPU/EUP path: f32 up/down casts raise vreg
            # pressure, so keep the block modest for 2-byte dtypes.
            auto_block = 4 * 1024 * 1024
    elif gen is not None and gen >= 7:                   # v7x: 64 MiB VMEM / TC
        vmem_limit = 32 * 1024 * 1024
        auto_block = 4 * 1024 * 1024
    else:                                                # unknown / older: be safe
        vmem_limit = None
        auto_block = 2 * 1024 * 1024
    if target_block_bytes is None:
        target_block_bytes = auto_block

    # ---- row tile ------------------------------------------------------------
    # Budget-limited, pack-aligned, never bigger than the pack-rounded row count.
    tile_rows = max(pack, (target_block_bytes // (lanes * itemsize)) // pack * pack)
    tile_rows = min(tile_rows, _round_up(rows, pack))

    # Keep >= min_blocks grid steps when the tensor allows it so the
    # DMA-in / tanh / DMA-out pipeline has depth (and both v7x TCs get >= 2 blocks).
    min_blocks = 4 if two_cores else 3
    if rows >= min_blocks * pack:
        cap = max(pack, (rows // min_blocks) // pack * pack)
        tile_rows = min(tile_rows, cap)
    elif two_cores and rows >= 2 * pack:
        # Small tensor on v7x: at least one block per TensorCore.
        cap = max(pack, (rows // 2) // pack * pack)
        tile_rows = min(tile_rows, cap)

    if tile_rows >= rows:
        # Single block covering exactly the array (block == full array dims is
        # always legal, no ragged edge at all).
        tile_rows = rows

    grid_len = -(-rows // tile_rows)
    if two_cores and grid_len > 1 and grid_len % 2 == 1:
        # Odd grid on a 2-TC chip leaves one core a straggler; try one step finer.
        t2 = max(pack, _round_up(-(-rows // (grid_len + 1)), pack))
        if -(-rows // t2) % 2 == 0:
            tile_rows = t2
            grid_len = -(-rows // tile_rows)

    x2d = x.reshape(rows, lanes)

    cp_kwargs = dict(dimension_semantics=("parallel",))
    if vmem_limit is not None:
        cp_kwargs["vmem_limit_bytes"] = vmem_limit

    call_kwargs = {}
    if donate_input:
        # Alias x -> out: halves HBM footprint when x is actually donatable.
        # Off by default (XLA inserts a defensive copy when x stays live).
        call_kwargs["input_output_aliases"] = {0: 0}

    out2d = pl.pallas_call(
        _tanh_kernel,
        out_shape=jax.ShapeDtypeStruct((rows, lanes), x.dtype),
        grid_spec=pltpu.PrefetchScalarGridSpec(
            num_scalar_prefetch=0,
            grid=(grid_len,),
            in_specs=[pl.BlockSpec((tile_rows, lanes), lambda i: (i, 0))],
            out_specs=pl.BlockSpec((tile_rows, lanes), lambda i: (i, 0)),
        ),
        compiler_params=pltpu.CompilerParams(**cp_kwargs),
        **call_kwargs,
    )(x2d)

    return out2d.reshape(orig_shape)


if __name__ == "__main__":
    key = jax.random.PRNGKey(0)
    x = jax.random.normal(key, (2, 4, 16, 16), dtype=jnp.float32)  # NCHW, as in the module

    # Force the Pallas path even though this demo tensor is below the
    # small-tensor fallback threshold.
    y = tanh_pallas(x, min_pallas_bytes=0)
    jax.block_until_ready(y)

    y_ref = jnp.tanh(x)
    assert y.shape == x.shape and y.dtype == x.dtype
    assert jnp.allclose(y, y_ref, atol=1e-6, rtol=1e-6)

    # Also exercise the multi-block pipelined path on a mid-size tensor.
    x2 = jax.random.normal(jax.random.PRNGKey(1), (8, 64, 32, 32), dtype=jnp.float32)
    y2 = tanh_pallas(x2, min_pallas_bytes=0)
    jax.block_until_ready(y2)
    assert jnp.allclose(y2, jnp.tanh(x2), atol=1e-6, rtol=1e-6)

    print("KERNEL_OK")
</pallas_src>

<mosaic_0001>
module attributes {stable_mosaic.version = 11 : i64} {
  func.func @_tanh_kernel(%arg0: i32, %arg1: memref<2x1024xf32, #tpu.memory_space<vmem>>, %arg2: memref<2x1024xf32, #tpu.memory_space<vmem>>) attributes {dimension_semantics = [#tpu.dimension_semantics<parallel>], iteration_bounds = array<i64: 1>, scalar_prefetch = 0 : i64, scratch_operands = 0 : i64, tpu.core_type = #tpu.core_type<tc>, window_params = [{transform_indices = @transform_0, window_bounds = array<i64: 2, 1024>}, {transform_indices = @transform_1, window_bounds = array<i64: 2, 1024>}]} {
    %c0 = arith.constant 0 : index
    %c0_0 = arith.constant 0 : index
    %0 = vector.load %arg1[%c0, %c0_0] : memref<2x1024xf32, #tpu.memory_space<vmem>>, vector<2x1024xf32>
    %1 = math.tanh %0 : vector<2x1024xf32>
    %c0_1 = arith.constant 0 : index
    %c0_2 = arith.constant 0 : index
    %2 = vector.load %arg2[%c0_1, %c0_2] : memref<2x1024xf32, #tpu.memory_space<vmem>>, vector<2x1024xf32>
    tpu.vector_store %arg2[%c0_1, %c0_2], %1 {strides = array<i32>} : memref<2x1024xf32, #tpu.memory_space<vmem>>, vector<2x1024xf32>,
    return
  }
  func.func @transform_0(%arg0: i32) -> (i32, i32) {
    %c0_i32 = arith.constant 0 : i32
    %c0_i32_0 = arith.constant 0 : i32
    return %arg0, %c0_i32 : i32, i32
  }
  func.func @transform_1(%arg0: i32) -> (i32, i32) {
    %c0_i32 = arith.constant 0 : i32
    %c0_i32_0 = arith.constant 0 : i32
    return %arg0, %c0_i32 : i32, i32
  }
}

</mosaic_0001>

<bundles_post_ra>
// kernel: tpu_custom_call.1
= control target key start
LH: loop header
LB: loop body
LE: loop exit
PB: predicated region body
PF: predicated region fallthrough
CT: control target
= control target key end

     0   :  { %6 = vsyncpa [#allocation3], 0  ;;  %s132_s0 = inlined_call_operand.hbm [shape: f32[2,1024], index: 0, kind: input, shape index: {}]   ;;  %s133_s1 = inlined_call_operand.hbm [shape: f32[2,1024], index: 1, kind: output, shape index: {}]  }
   0x1   :  { %7 = vsyncpa [#allocation4], 0  ;;  %s96_s6 = smov [#allocation2]   ;;  %s48_s10 = scalar_lea.hbm %s132_s0, 256 }
   0x2   :  { %s14_s7 = sshll.u32 %s96_s6, 4  ;;  %p49_p0 = scmp.ne.s32.totalorder %s132_s0, %s48_s10  ;;  %s15_s7 = int_to_ptr.vmem [resolvable:$true] %s14_s7 }
   0x3   :  { %p52_p1 = scmp.lt.u32.totalorder %s48_s10, %s132_s0 }
   0x5   :  { %p54_p2 = pnand %p52_p1, %p49_p0 }
   0x7   :  { %57 = shalt.err (!%p54_p2)
}
   0x8   :  { %s58_s15 = scalar_lea.vmem %s15_s7, 256  ;;  %p63_p4 = scmp.lt.s32.totalorder %s15_s7, %s15_s7 }
   0x9   :  { %p59_p3 = scmp.ne.s32.totalorder %s15_s7, %s58_s15  ;;  %p64_p5 = scmp.lt.s32.totalorder %s58_s15, %s58_s15 }
   0xb   :  { %p65_p6 = por %p64_p5, %p63_p4 }
   0xd   :  { %p66_p7 = pnand %p65_p6, %p59_p3 }
   0xf   :  { %69 = shalt.err (!%p66_p7)
}
  0x10   :  { %17 = dma.hbm_to_vmem [thread:$0]  %s132_s0, 256, %s15_s7, [#allocation3]  }
  0x11   :  { %92 = dma.done.wait [#allocation3], 256  }
  0x12   :  { %93 = vsyncadd [#allocation3], 4294967040  ;;  %v21_v0 = vld [vmem:[#allocation2] sm:$0xff]  ;;  %v22_v1 = vld [vmem:[#allocation2 + $0x8] sm:$0xff]  ;;  %s97_s18 = smov [#allocation5]  }
  0x13   :  { %44 = vtanh.f32 %v21_v0  ;;  %s33_s19 = sshll.u32 %s97_s18, 4  ;;  %s34_s19 = int_to_ptr.vmem [resolvable:$true] %s33_s19 }
  0x14   :  { %46 = vtanh.f32 %v22_v1  ;;  %s70_s20 = scalar_lea.vmem %s34_s19, 256  ;;  %p75_p9 = scmp.lt.s32.totalorder %s34_s19, %s34_s19 }
  0x15   :  { %p71_p8 = scmp.ne.s32.totalorder %s34_s19, %s70_s20  ;;  %p76_p10 = scmp.lt.s32.totalorder %s70_s20, %s70_s20 }
  0x17   :  { %p77_p11 = por %p76_p10, %p75_p9 }
  0x19   :  { %p78_p12 = pnand %p77_p11, %p71_p8 }
  0x1d   :  { %v45_v2 = vpop.eup %44 }
  0x1e   :  { %v47_v3 = vpop.eup %46  ;;  %25 = vst [vmem:[#allocation5] sm:$0xff] %v45_v2 }
  0x1f   :  { %26 = vst [vmem:[#allocation5 + $0x8] sm:$0xff] %v47_v3 }
  0x20   :  { %81 = shalt.err (!%p78_p12)
}
  0x21   :  { %s82_s22 = scalar_lea.hbm %s133_s1, 256 }
  0x22   :  { %p83_p13 = scmp.ne.s32.totalorder %s133_s1, %s82_s22  ;;  %p86_p0 = scmp.lt.u32.totalorder %s82_s22, %s133_s1 }
  0x24   :  { %p88_p1 = pnand %p86_p0, %p83_p13 }
  0x26   :  { %91 = shalt.err (!%p88_p1)
}
  0x27   :  { %36 = dma.vmem_to_hbm [thread:$0]  %s34_s19, 256, %s133_s1, [#allocation4]  }
  0x28   :  { %94 = dma.done.wait [#allocation4], 256  }
  0x29   :  { %95 = vsyncadd [#allocation4], 4294967040 }
  0x2a   :  { %40 = vsyncpa [#allocation3], 1 }
  0x2b   :  { %41 = vsyncpa [#allocation4], 1 }

</bundles_post_ra>
